<compile_context>
chip_gen: v5e
topology: v5e:2x2
jax: 0.10.0
libtpu: 0.0.40
codegen_flags: <defaults>
</compile_context>

<pallas_src>
import functools

import jax
import jax.numpy as jnp
from jax import lax
from jax.experimental import pallas as pl
from jax.experimental.pallas import tpu as pltpu


def _round_up(v, m):
    return ((v + m - 1) // m) * m


def _dw_gn_pw_kernel(x_ref, mask_ref, wdw_ref, chp_ref, mrow_ref, wblk_ref,
                     bpw_ref, o_ref, *, K, Wp, Lpad, n_valid, n_per_group, eps):
    """One grid step: Btile images, rows packed as (b_local, channel).

    x_ref:    (Rtile, Lin)   flattened, spatially padded input rows
    mask_ref: (1, Lpad)      1.0 on valid output lanes, 0.0 on padded lanes
    wdw_ref:  (Rtile, K*K)   per-row depthwise tap weights
    chp_ref:  (Rtile, 3)     columns: [gamma, beta, b_dw] per row
    mrow_ref: (Rtile, Rtile) group-membership matrix (same image & group)
    wblk_ref: (Rout, Rtile)  block-diagonal pointwise weight (per image)
    bpw_ref:  (Rout, 1)      pointwise bias per output row
    o_ref:    (Rout, Lpad)   flattened output rows (b_local, out_channel)
    """
    rtile = wdw_ref.shape[0]
    wdw = wdw_ref[...].astype(jnp.float32)                  # (Rtile, K*K)

    # ---- depthwise KxK conv (stride 1, dilation 1) ----
    # tap (ky,kx) == lane shift of ky*Wp+kx; read the shifted window straight
    # from the ref so the shift is absorbed in load addressing.
    acc = None
    for ky in range(K):
        for kx in range(K):
            s = ky * Wp + kx
            xw = x_ref[:, s:s + Lpad].astype(jnp.float32)   # (Rtile, Lpad)
            term = wdw[:, ky * K + kx:ky * K + kx + 1] * xw
            acc = term if acc is None else acc + term

    # ---- GroupNorm statistics on raw acc (bias folded analytically) ----
    maskf = mask_ref[...].astype(jnp.float32)               # (1, Lpad)
    accm = acc * maskf
    s1 = jnp.sum(accm, axis=1, keepdims=True)               # (Rtile, 1)
    s2 = jnp.sum(accm * acc, axis=1, keepdims=True)         # (Rtile, 1)

    gamma = chp_ref[:, 0:1].astype(jnp.float32)             # (Rtile, 1)
    beta = chp_ref[:, 1:2].astype(jnp.float32)
    bdw = chp_ref[:, 2:3].astype(jnp.float32)
    nval = jnp.float32(n_valid)
    s1b = s1 + bdw * nval                                   # stats of acc + b
    s2b = s2 + 2.0 * bdw * s1 + bdw * bdw * nval

    # single MXU round trip for both group sums
    stats = jnp.concatenate([s1b, s2b], axis=1)             # (Rtile, 2)
    mrow = mrow_ref[...].astype(jnp.float32)                # (Rtile, Rtile)
    gstats = jnp.dot(mrow, stats, preferred_element_type=jnp.float32)
    inv_n = jnp.float32(1.0 / n_per_group)
    mean = gstats[:, 0:1] * inv_n                           # (Rtile, 1)
    var = jnp.maximum(gstats[:, 1:2] * inv_n - mean * mean, 0.0)
    inv = lax.rsqrt(var + jnp.float32(eps))
    scale = inv * gamma                                     # (Rtile, 1)
    shift = beta + (bdw - mean) * scale                     # (Rtile, 1)

    # ---- fold GN affine into the block-diagonal pointwise weight ----
    # wscaled[o,c] = wblk[o,c]*scale[c] via diag(scale); merge with the shift
    # projection in one small matmul.
    wblk = wblk_ref[...].astype(jnp.float32)                # (Rout, Rtile)
    r_i = lax.broadcasted_iota(jnp.int32, (rtile, rtile), 0)
    c_i = lax.broadcasted_iota(jnp.int32, (rtile, rtile), 1)
    diag_scale = jnp.where(r_i == c_i, scale, 0.0)          # (Rtile, Rtile)
    aug = jnp.concatenate([diag_scale, shift], axis=1)      # (Rtile, Rtile+1)
    waug = jnp.dot(wblk, aug, preferred_element_type=jnp.float32)
    wscaled = waug[:, :rtile]                               # (Rout, Rtile)
    bias_eff = waug[:, rtile:rtile + 1] + bpw_ref[...].astype(jnp.float32)

    # ---- pointwise 1x1 conv: one MXU matmul, one lane-dense store ----
    out = jnp.dot(wscaled, acc, preferred_element_type=jnp.float32) + bias_eff
    o_ref[...] = out.astype(o_ref.dtype)


def _pick_btile(N, Cin, Cout, per_img_bytes, budget, cap):
    """Largest useful batch tile: rows multiple of 8 sublanes, fits VMEM."""
    divisors = [b for b in range(1, min(N, cap) + 1) if N % b == 0]
    fitting = [b for b in divisors if b * per_img_bytes <= budget] or [1]
    packed = [b for b in fitting if (b * Cin) % 8 == 0 and (b * Cout) % 8 == 0]
    if packed:
        return min(packed)           # smallest packed tile -> most grid steps
    if N in fitting:
        return N                     # full array rows: block == array dims
    return max(fitting)


def depthwise_conv2d_block(x, w_dw, b_dw, gamma, beta, w_pw, b_pw, *,
                           kernel_size=3, padding=1, stride=1, dilation=1,
                           num_groups=4, eps=1e-5, max_batch_tile=8,
                           vmem_budget_bytes=16 * 1024 * 1024):
    """Pallas implementation of DepthWiseConv2d.forward (NCHW)."""
    if stride != 1 or dilation != 1:
        raise NotImplementedError("stride/dilation != 1 not implemented")
    N, Cin, H, W = x.shape
    Cout = w_pw.shape[0]
    K = kernel_size
    assert Cin % num_groups == 0
    cpg = Cin // num_groups

    Hp, Wp = H + 2 * padding, W + 2 * padding
    Hout, Wout = Hp - K + 1, Wp - K + 1
    L = Hout * Wp                                  # flattened output length
    Lpad = _round_up(L, 128)                       # lane-dense output length
    max_shift = (K - 1) * Wp + (K - 1)
    Lin = _round_up(max_shift + Lpad, 128)         # flattened input length

    # ---- batch tile under a VMEM budget (double-buffered blocks + temps) ----
    itemsize = jnp.dtype(x.dtype).itemsize
    per_img = (2 * Cin * Lin * itemsize            # input block (2 buffers)
               + 2 * Cout * Lpad * itemsize        # output block (2 buffers)
               + 3 * Cin * Lpad * 4)               # fp32 acc/accm/term temps
    btile = _pick_btile(N, Cin, Cout, per_img, vmem_budget_bytes,
                        max_batch_tile)
    Rtile = btile * Cin
    Rout = btile * Cout

    # ---- layout plumbing (wrapper side only) ----
    xp = jnp.pad(x, ((0, 0), (0, 0), (padding, padding), (padding, padding)))
    xf = xp.reshape(N, Cin, Hp * Wp)
    xf = jnp.pad(xf, ((0, 0), (0, 0), (0, Lin - Hp * Wp)))
    xf = xf.reshape(N * Cin, Lin)                  # rows ordered (n, c)

    lanes = jnp.arange(Lpad, dtype=jnp.int32)
    mask = ((lanes < L) & (lanes % Wp < Wout)).astype(jnp.float32)
    mask = mask.reshape(1, Lpad)

    wdw_rows = jnp.tile(w_dw.reshape(Cin, K * K).astype(jnp.float32),
                        (btile, 1))                                # (Rtile,KK)
    chp = jnp.tile(jnp.stack([gamma, beta, b_dw], axis=1).astype(jnp.float32),
                   (btile, 1))                                     # (Rtile, 3)
    rows = jnp.arange(Rtile)
    gid = (rows // Cin) * num_groups + (rows % Cin) // cpg
    mrow = (gid[:, None] == gid[None, :]).astype(jnp.float32)      # (Rtile,Rt)
    wblk = jnp.kron(jnp.eye(btile, dtype=jnp.float32),
                    w_pw.reshape(Cout, Cin).astype(jnp.float32))   # (Rout,Rt)
    bpw_rows = jnp.tile(b_pw.reshape(Cout, 1).astype(jnp.float32),
                        (btile, 1))                                # (Rout, 1)

    kernel = functools.partial(
        _dw_gn_pw_kernel, K=K, Wp=Wp, Lpad=Lpad,
        n_valid=float(Hout * Wout),
        n_per_group=float(cpg * Hout * Wout), eps=eps)

    out_flat = pl.pallas_call(
        kernel,
        out_shape=jax.ShapeDtypeStruct((N * Cout, Lpad), x.dtype),
        grid_spec=pltpu.PrefetchScalarGridSpec(
            num_scalar_prefetch=0,
            grid=(N // btile,),
            in_specs=[
                pl.BlockSpec((Rtile, Lin), lambda n: (n, 0)),
                pl.BlockSpec((1, Lpad), lambda n: (0, 0)),
                pl.BlockSpec((Rtile, K * K), lambda n: (0, 0)),
                pl.BlockSpec((Rtile, 3), lambda n: (0, 0)),
                pl.BlockSpec((Rtile, Rtile), lambda n: (0, 0)),
                pl.BlockSpec((Rout, Rtile), lambda n: (0, 0)),
                pl.BlockSpec((Rout, 1), lambda n: (0, 0)),
            ],
            out_specs=pl.BlockSpec((Rout, Lpad), lambda n: (n, 0)),
        ),
        compiler_params=pltpu.CompilerParams(
            dimension_semantics=("parallel",),
            vmem_limit_bytes=32 * 1024 * 1024),
    )(xf, mask, wdw_rows, chp, mrow, wblk, bpw_rows)

    # un-flatten: lane l = h*Wp + w ; drop padded lanes / columns
    out = out_flat[:, :L].reshape(N, Cout, Hout, Wp)[:, :, :, :Wout]
    return out


def _reference(x, w_dw, b_dw, gamma, beta, w_pw, b_pw, *, num_groups=4, eps=1e-5):
    """Pure-JAX reference matching the PyTorch module semantics."""
    Cin = x.shape[1]
    y = lax.conv_general_dilated(
        x, w_dw, window_strides=(1, 1), padding=((1, 1), (1, 1)),
        dimension_numbers=('NCHW', 'OIHW', 'NCHW'),
        feature_group_count=Cin)
    y = y + b_dw[None, :, None, None]
    N, C, H, W = y.shape
    yg = y.reshape(N, num_groups, -1)
    mean = yg.mean(axis=2, keepdims=True)
    var = yg.var(axis=2, keepdims=True)
    yn = ((yg - mean) / jnp.sqrt(var + eps)).reshape(N, C, H, W)
    yn = yn * gamma[None, :, None, None] + beta[None, :, None, None]
    Cout = w_pw.shape[0]
    out = jnp.einsum('oc,nchw->nohw', w_pw.reshape(Cout, C), yn)
    return out + b_pw[None, :, None, None]


if __name__ == "__main__":
    # small shapes consistent with the module
    N, Cin, Cout, H, W = 2, 4, 8, 16, 16
    K = 3

    key = jax.random.PRNGKey(0)
    kx, k1, k2, k3, k4 = jax.random.split(key, 5)

    x = jax.random.normal(kx, (N, Cin, H, W), dtype=jnp.float32)

    # deterministic parameter init (PyTorch-default-style uniform bounds)
    fan1 = 1 * K * K
    b1 = 1.0 / (fan1 ** 0.5)
    w_dw = jax.random.uniform(k1, (Cin, 1, K, K), jnp.float32, -b1, b1)
    b_dw = jax.random.uniform(k2, (Cin,), jnp.float32, -b1, b1)
    gamma = jnp.ones((Cin,), jnp.float32)
    beta = jnp.zeros((Cin,), jnp.float32)
    fan2 = Cin * 1 * 1
    b2 = 1.0 / (fan2 ** 0.5)
    w_pw = jax.random.uniform(k3, (Cout, Cin, 1, 1), jnp.float32, -b2, b2)
    b_pw = jax.random.uniform(k4, (Cout,), jnp.float32, -b2, b2)

    out = depthwise_conv2d_block(x, w_dw, b_dw, gamma, beta, w_pw, b_pw,
                                 kernel_size=K, padding=1, num_groups=4)
    out = jax.block_until_ready(out)

    ref = _reference(x, w_dw, b_dw, gamma, beta, w_pw, b_pw, num_groups=4)
    ref = jax.block_until_ready(ref)

    assert out.shape == (N, Cout, H, W), out.shape
    max_err = float(jnp.max(jnp.abs(out - ref)))
    assert max_err < 1e-3, f"mismatch vs reference: max abs err = {max_err}"
    print("KERNEL_OK")
</pallas_src>

<mosaic_0001>
module attributes {stable_mosaic.version = 11 : i64} {
  func.func @_dw_gn_pw_kernel(%arg0: i32, %arg1: memref<8x512xf32, #tpu.memory_space<vmem>>, %arg2: memref<1x384xf32, #tpu.memory_space<vmem>>, %arg3: memref<8x9xf32, #tpu.memory_space<vmem>>, %arg4: memref<8x3xf32, #tpu.memory_space<vmem>>, %arg5: memref<8x8xf32, #tpu.memory_space<vmem>>, %arg6: memref<16x8xf32, #tpu.memory_space<vmem>>, %arg7: memref<16x1xf32, #tpu.memory_space<vmem>>, %arg8: memref<16x384xf32, #tpu.memory_space<vmem>>) attributes {dimension_semantics = [#tpu.dimension_semantics<parallel>], iteration_bounds = array<i64: 1>, scalar_prefetch = 0 : i64, scratch_operands = 0 : i64, tpu.core_type = #tpu.core_type<tc>, window_params = [{transform_indices = @transform_0, window_bounds = array<i64: 8, 512>}, {pipeline_mode = #tpu.pipeline_mode<synchronous>, transform_indices = @transform_1, window_bounds = array<i64: 1, 384>}, {pipeline_mode = #tpu.pipeline_mode<synchronous>, transform_indices = @transform_2, window_bounds = array<i64: 8, 9>}, {pipeline_mode = #tpu.pipeline_mode<synchronous>, transform_indices = @transform_3, window_bounds = array<i64: 8, 3>}, {pipeline_mode = #tpu.pipeline_mode<synchronous>, transform_indices = @transform_4, window_bounds = array<i64: 8, 8>}, {pipeline_mode = #tpu.pipeline_mode<synchronous>, transform_indices = @transform_5, window_bounds = array<i64: 16, 8>}, {pipeline_mode = #tpu.pipeline_mode<synchronous>, transform_indices = @transform_6, window_bounds = array<i64: 16, 1>}, {transform_indices = @transform_7, window_bounds = array<i64: 16, 384>}]} {
    %c0 = arith.constant 0 : index
    %c0_0 = arith.constant 0 : index
    %0 = vector.load %arg3[%c0, %c0_0] : memref<8x9xf32, #tpu.memory_space<vmem>>, vector<8x9xf32>
    %c0_1 = arith.constant 0 : index
    %c0_2 = arith.constant 0 : index
    %1 = vector.load %arg1[%c0_1, %c0_2] : memref<8x512xf32, #tpu.memory_space<vmem>>, vector<8x384xf32>
    %2 = vector.extract_strided_slice %0 {offsets = [0, 0], sizes = [8, 1], strides = [1, 1]} : vector<8x9xf32> to vector<8x1xf32>
    %3 = vector.broadcast %2 : vector<8x1xf32> to vector<8x384xf32>
    %4 = arith.mulf %3, %1 : vector<8x384xf32>
    %c0_3 = arith.constant 0 : index
    %c1 = arith.constant 1 : index
    %5 = vector.load %arg1[%c0_3, %c1] : memref<8x512xf32, #tpu.memory_space<vmem>>, vector<8x384xf32>
    %6 = vector.extract_strided_slice %0 {offsets = [0, 1], sizes = [8, 1], strides = [1, 1]} : vector<8x9xf32> to vector<8x1xf32>
    %7 = vector.broadcast %6 : vector<8x1xf32> to vector<8x384xf32>
    %8 = arith.mulf %7, %5 : vector<8x384xf32>
    %9 = arith.addf %4, %8 : vector<8x384xf32>
    %c0_4 = arith.constant 0 : index
    %c2 = arith.constant 2 : index
    %10 = vector.load %arg1[%c0_4, %c2] : memref<8x512xf32, #tpu.memory_space<vmem>>, vector<8x384xf32>
    %11 = vector.extract_strided_slice %0 {offsets = [0, 2], sizes = [8, 1], strides = [1, 1]} : vector<8x9xf32> to vector<8x1xf32>
    %12 = vector.broadcast %11 : vector<8x1xf32> to vector<8x384xf32>
    %13 = arith.mulf %12, %10 : vector<8x384xf32>
    %14 = arith.addf %9, %13 : vector<8x384xf32>
    %c0_5 = arith.constant 0 : index
    %c18 = arith.constant 18 : index
    %15 = vector.load %arg1[%c0_5, %c18] : memref<8x512xf32, #tpu.memory_space<vmem>>, vector<8x384xf32>
    %16 = vector.extract_strided_slice %0 {offsets = [0, 3], sizes = [8, 1], strides = [1, 1]} : vector<8x9xf32> to vector<8x1xf32>
    %17 = vector.broadcast %16 : vector<8x1xf32> to vector<8x384xf32>
    %18 = arith.mulf %17, %15 : vector<8x384xf32>
    %19 = arith.addf %14, %18 : vector<8x384xf32>
    %c0_6 = arith.constant 0 : index
    %c19 = arith.constant 19 : index
    %20 = vector.load %arg1[%c0_6, %c19] : memref<8x512xf32, #tpu.memory_space<vmem>>, vector<8x384xf32>
    %21 = vector.extract_strided_slice %0 {offsets = [0, 4], sizes = [8, 1], strides = [1, 1]} : vector<8x9xf32> to vector<8x1xf32>
    %22 = vector.broadcast %21 : vector<8x1xf32> to vector<8x384xf32>
    %23 = arith.mulf %22, %20 : vector<8x384xf32>
    %24 = arith.addf %19, %23 : vector<8x384xf32>
    %c0_7 = arith.constant 0 : index
    %c20 = arith.constant 20 : index
    %25 = vector.load %arg1[%c0_7, %c20] : memref<8x512xf32, #tpu.memory_space<vmem>>, vector<8x384xf32>
    %26 = vector.extract_strided_slice %0 {offsets = [0, 5], sizes = [8, 1], strides = [1, 1]} : vector<8x9xf32> to vector<8x1xf32>
    %27 = vector.broadcast %26 : vector<8x1xf32> to vector<8x384xf32>
    %28 = arith.mulf %27, %25 : vector<8x384xf32>
    %29 = arith.addf %24, %28 : vector<8x384xf32>
    %c0_8 = arith.constant 0 : index
    %c36 = arith.constant 36 : index
    %30 = vector.load %arg1[%c0_8, %c36] : memref<8x512xf32, #tpu.memory_space<vmem>>, vector<8x384xf32>
    %31 = vector.extract_strided_slice %0 {offsets = [0, 6], sizes = [8, 1], strides = [1, 1]} : vector<8x9xf32> to vector<8x1xf32>
    %32 = vector.broadcast %31 : vector<8x1xf32> to vector<8x384xf32>
    %33 = arith.mulf %32, %30 : vector<8x384xf32>
    %34 = arith.addf %29, %33 : vector<8x384xf32>
    %c0_9 = arith.constant 0 : index
    %c37 = arith.constant 37 : index
    %35 = vector.load %arg1[%c0_9, %c37] : memref<8x512xf32, #tpu.memory_space<vmem>>, vector<8x384xf32>
    %36 = vector.extract_strided_slice %0 {offsets = [0, 7], sizes = [8, 1], strides = [1, 1]} : vector<8x9xf32> to vector<8x1xf32>
    %37 = vector.broadcast %36 : vector<8x1xf32> to vector<8x384xf32>
    %38 = arith.mulf %37, %35 : vector<8x384xf32>
    %39 = arith.addf %34, %38 : vector<8x384xf32>
    %c0_10 = arith.constant 0 : index
    %c38 = arith.constant 38 : index
    %40 = vector.load %arg1[%c0_10, %c38] : memref<8x512xf32, #tpu.memory_space<vmem>>, vector<8x384xf32>
    %41 = vector.extract_strided_slice %0 {offsets = [0, 8], sizes = [8, 1], strides = [1, 1]} : vector<8x9xf32> to vector<8x1xf32>
    %42 = vector.broadcast %41 : vector<8x1xf32> to vector<8x384xf32>
    %43 = arith.mulf %42, %40 : vector<8x384xf32>
    %44 = arith.addf %39, %43 : vector<8x384xf32>
    %c0_11 = arith.constant 0 : index
    %c0_12 = arith.constant 0 : index
    %45 = vector.load %arg2[%c0_11, %c0_12] : memref<1x384xf32, #tpu.memory_space<vmem>>, vector<1x384xf32>
    %46 = vector.broadcast %45 : vector<1x384xf32> to vector<8x384xf32>
    %47 = arith.mulf %44, %46 : vector<8x384xf32>
    %cst = arith.constant dense<0.000000e+00> : vector<8xf32>
    %48 = vector.multi_reduction <add>, %47, %cst [1] : vector<8x384xf32> to vector<8xf32>
    %49 = vector.shape_cast %48 : vector<8xf32> to vector<8x1xf32>
    %50 = arith.mulf %47, %44 : vector<8x384xf32>
    %cst_13 = arith.constant dense<0.000000e+00> : vector<8xf32>
    %51 = vector.multi_reduction <add>, %50, %cst_13 [1] : vector<8x384xf32> to vector<8xf32>
    %52 = vector.shape_cast %51 : vector<8xf32> to vector<8x1xf32>
    %c0_14 = arith.constant 0 : index
    %c0_15 = arith.constant 0 : index
    %53 = vector.load %arg4[%c0_14, %c0_15] : memref<8x3xf32, #tpu.memory_space<vmem>>, vector<8x1xf32>
    %c0_16 = arith.constant 0 : index
    %c1_17 = arith.constant 1 : index
    %54 = vector.load %arg4[%c0_16, %c1_17] : memref<8x3xf32, #tpu.memory_space<vmem>>, vector<8x1xf32>
    %c0_18 = arith.constant 0 : index
    %c2_19 = arith.constant 2 : index
    %55 = vector.load %arg4[%c0_18, %c2_19] : memref<8x3xf32, #tpu.memory_space<vmem>>, vector<8x1xf32>
    %cst_20 = arith.constant 2.560000e+02 : f32
    %56 = vector.broadcast %cst_20 : f32 to vector<8x1xf32>
    %57 = arith.mulf %55, %56 : vector<8x1xf32>
    %58 = arith.addf %49, %57 : vector<8x1xf32>
    %cst_21 = arith.constant 2.000000e+00 : f32
    %59 = vector.broadcast %cst_21 : f32 to vector<8x1xf32>
    %60 = arith.mulf %59, %55 : vector<8x1xf32>
    %61 = arith.mulf %60, %49 : vector<8x1xf32>
    %62 = arith.addf %52, %61 : vector<8x1xf32>
    %63 = arith.mulf %55, %55 : vector<8x1xf32>
    %cst_22 = arith.constant 2.560000e+02 : f32
    %64 = vector.broadcast %cst_22 : f32 to vector<8x1xf32>
    %65 = arith.mulf %63, %64 : vector<8x1xf32>
    %66 = arith.addf %62, %65 : vector<8x1xf32>
    %67 = tpu.concatenate %58, %66 in 1 : vector<8x1xf32>, vector<8x1xf32> -> vector<8x2xf32>
    %c0_23 = arith.constant 0 : index
    %c0_24 = arith.constant 0 : index
    %68 = vector.load %arg5[%c0_23, %c0_24] : memref<8x8xf32, #tpu.memory_space<vmem>>, vector<8x8xf32>
    %cst_25 = arith.constant dense<0.000000e+00> : vector<8x2xf32>
    %69 = tpu.matmul %68, %67, %cst_25 {dimension_numbers = #tpu.dot_dimension_numbers<[1], [0], [0], [1], [0, 0, 1, 1], [], []>} : vector<8x8xf32>, vector<8x2xf32>, vector<8x2xf32> -> vector<8x2xf32>
    %70 = vector.extract_strided_slice %69 {offsets = [0, 0], sizes = [8, 1], strides = [1, 1]} : vector<8x2xf32> to vector<8x1xf32>
    %cst_26 = arith.constant 3.906250e-03 : f32
    %71 = vector.broadcast %cst_26 : f32 to vector<8x1xf32>
    %72 = arith.mulf %70, %71 : vector<8x1xf32>
    %73 = vector.extract_strided_slice %69 {offsets = [0, 1], sizes = [8, 1], strides = [1, 1]} : vector<8x2xf32> to vector<8x1xf32>
    %cst_27 = arith.constant 3.906250e-03 : f32
    %74 = vector.broadcast %cst_27 : f32 to vector<8x1xf32>
    %75 = arith.mulf %73, %74 : vector<8x1xf32>
    %76 = arith.mulf %72, %72 : vector<8x1xf32>
    %77 = arith.subf %75, %76 : vector<8x1xf32>
    %cst_28 = arith.constant 0.000000e+00 : f32
    %78 = vector.broadcast %cst_28 : f32 to vector<8x1xf32>
    %79 = arith.maximumf %77, %78 : vector<8x1xf32>
    %cst_29 = arith.constant 9.99999974E-6 : f32
    %80 = vector.broadcast %cst_29 : f32 to vector<8x1xf32>
    %81 = arith.addf %79, %80 : vector<8x1xf32>
    %82 = math.rsqrt %81 : vector<8x1xf32>
    %83 = arith.mulf %82, %53 : vector<8x1xf32>
    %84 = arith.subf %55, %72 : vector<8x1xf32>
    %85 = arith.mulf %84, %83 : vector<8x1xf32>
    %86 = arith.addf %54, %85 : vector<8x1xf32>
    %c0_30 = arith.constant 0 : index
    %c0_31 = arith.constant 0 : index
    %87 = vector.load %arg6[%c0_30, %c0_31] : memref<16x8xf32, #tpu.memory_space<vmem>>, vector<16x8xf32>
    %88 = tpu.iota {dimensions = array<i32: 0>} : vector<8x8xi32>
    %89 = tpu.iota {dimensions = array<i32: 1>} : vector<8x8xi32>
    %90 = arith.cmpi eq, %88, %89 : vector<8x8xi32>
    %cst_32 = arith.constant 0.000000e+00 : f32
    %91 = vector.shape_cast %83 : vector<8x1xf32> to vector<8x1xf32>
    %92 = vector.broadcast %91 : vector<8x1xf32> to vector<8x8xf32>
    %93 = vector.broadcast %cst_32 : f32 to vector<8x8xf32>
    %94 = arith.select %90, %92, %93 : vector<8x8xi1>, vector<8x8xf32>
    %95 = tpu.concatenate %94, %86 in 1 : vector<8x8xf32>, vector<8x1xf32> -> vector<8x9xf32>
    %cst_33 = arith.constant dense<0.000000e+00> : vector<16x9xf32>
    %96 = tpu.matmul %87, %95, %cst_33 {dimension_numbers = #tpu.dot_dimension_numbers<[1], [0], [0], [1], [0, 0, 1, 1], [], []>} : vector<16x8xf32>, vector<8x9xf32>, vector<16x9xf32> -> vector<16x9xf32>
    %97 = vector.extract_strided_slice %96 {offsets = [0, 0], sizes = [16, 8], strides = [1, 1]} : vector<16x9xf32> to vector<16x8xf32>
    %98 = vector.extract_strided_slice %96 {offsets = [0, 8], sizes = [16, 1], strides = [1, 1]} : vector<16x9xf32> to vector<16x1xf32>
    %c0_34 = arith.constant 0 : index
    %c0_35 = arith.constant 0 : index
    %99 = vector.load %arg7[%c0_34, %c0_35] : memref<16x1xf32, #tpu.memory_space<vmem>>, vector<16x1xf32>
    %100 = arith.addf %98, %99 : vector<16x1xf32>
    %cst_36 = arith.constant dense<0.000000e+00> : vector<16x384xf32>
    %101 = tpu.matmul %97, %44, %cst_36 {dimension_numbers = #tpu.dot_dimension_numbers<[1], [0], [0], [1], [0, 0, 1, 1], [], []>} : vector<16x8xf32>, vector<8x384xf32>, vector<16x384xf32> -> vector<16x384xf32>
    %102 = vector.broadcast %100 : vector<16x1xf32> to vector<16x384xf32>
    %103 = arith.addf %101, %102 : vector<16x384xf32>
    %c0_37 = arith.constant 0 : index
    %c0_38 = arith.constant 0 : index
    %104 = vector.load %arg8[%c0_37, %c0_38] : memref<16x384xf32, #tpu.memory_space<vmem>>, vector<16x384xf32>
    tpu.vector_store %arg8[%c0_37, %c0_38], %103 {strides = array<i32>} : memref<16x384xf32, #tpu.memory_space<vmem>>, vector<16x384xf32>,
    return
  }
  func.func @transform_0(%arg0: i32) -> (i32, i32) {
    %c0_i32 = arith.constant 0 : i32
    %c0_i32_0 = arith.constant 0 : i32
    return %arg0, %c0_i32 : i32, i32
  }
  func.func @transform_1(%arg0: i32) -> (i32, i32) {
    %c0_i32 = arith.constant 0 : i32
    %c0_i32_0 = arith.constant 0 : i32
    %c0_i32_1 = arith.constant 0 : i32
    return %c0_i32, %c0_i32_0 : i32, i32
  }
  func.func @transform_2(%arg0: i32) -> (i32, i32) {
    %c0_i32 = arith.constant 0 : i32
    %c0_i32_0 = arith.constant 0 : i32
    %c0_i32_1 = arith.constant 0 : i32
    return %c0_i32, %c0_i32_0 : i32, i32
  }
  func.func @transform_3(%arg0: i32) -> (i32, i32) {
    %c0_i32 = arith.constant 0 : i32
    %c0_i32_0 = arith.constant 0 : i32
    %c0_i32_1 = arith.constant 0 : i32
    return %c0_i32, %c0_i32_0 : i32, i32
  }
  func.func @transform_4(%arg0: i32) -> (i32, i32) {
    %c0_i32 = arith.constant 0 : i32
    %c0_i32_0 = arith.constant 0 : i32
    %c0_i32_1 = arith.constant 0 : i32
    return %c0_i32, %c0_i32_0 : i32, i32
  }
  func.func @transform_5(%arg0: i32) -> (i32, i32) {
    %c0_i32 = arith.constant 0 : i32
    %c0_i32_0 = arith.constant 0 : i32
    %c0_i32_1 = arith.constant 0 : i32
    return %c0_i32, %c0_i32_0 : i32, i32
  }
  func.func @transform_6(%arg0: i32) -> (i32, i32) {
    %c0_i32 = arith.constant 0 : i32
    %c0_i32_0 = arith.constant 0 : i32
    %c0_i32_1 = arith.constant 0 : i32
    return %c0_i32, %c0_i32_0 : i32, i32
  }
  func.func @transform_7(%arg0: i32) -> (i32, i32) {
    %c0_i32 = arith.constant 0 : i32
    %c0_i32_0 = arith.constant 0 : i32
    return %arg0, %c0_i32 : i32, i32
  }
}

</mosaic_0001>

<bundles_post_ra>
// kernel: tpu_custom_call.1
= control target key start
LH: loop header
LB: loop body
LE: loop exit
PB: predicated region body
PF: predicated region fallthrough
CT: control target
= control target key end

     0   :  { %12 = vsyncpa [#allocation3], 0  ;;  %s878_s0 = inlined_call_operand.vmem [shape: f32[8,512], index: 0, kind: input, shape index: {}]   ;;  %s879_s1 = inlined_call_operand.vmem [shape: f32[1,384], index: 1, kind: input, shape index: {}]   ;;  %s880_s2 = inlined_call_operand.vmem [shape: f32[8,9], index: 2, kind: input, shape index: {}]   ;;  %s881_s3 = inlined_call_operand.vmem [shape: f32[8,3], index: 3, kind: input, shape index: {}]   ;;  %s882_s4 = inlined_call_operand.hbm [shape: f32[8,8], index: 4, kind: input, shape index: {}]   ;;  %s883_s5 = inlined_call_operand.vmem [shape: f32[16,8], index: 5, kind: input, shape index: {}]   ;;  %s884_s6 = inlined_call_operand.vmem [shape: f32[16,1], index: 6, kind: input, shape index: {}]   ;;  %s885_s7 = inlined_call_operand.hbm [shape: f32[16,384], index: 7, kind: output, shape index: {}]  }
   0x1   :  { %13 = vsyncpa [#allocation4], 0  ;;  %s27_s26 = sshll.u32 %s882_s4, 4  ;;  %s668_s27 = smov [#allocation2]   ;;  %s28_s26 = int_to_ptr.hbm [resolvable:$true] %s27_s26 }
   0x2   :  { %s29_s28 = sshll.u32 %s668_s27, 4  ;;  %s30_s28 = int_to_ptr.vmem [resolvable:$true] %s29_s28 }
   0x3   :  { %32 = dma.hbm_to_vmem [thread:$0]  %s28_s26, 128, %s30_s28, [#allocation3]  }
   0x4   :  { %664 = dma.done.wait [#allocation3], 128  }
   0x5   :  { %665 = vsyncadd [#allocation3], 4294967168  ;;  %v669_v0 = vmov 2   ;;  %v670_v1 = vmov 3   ;;  %v671_v2 = vmov 5   ;;  %v41_v3 = vld [vmem:[%s880_s2] sm:$0xff] }
   0x6   :  { %604 = vset.pattern.permute.xlu0 %v669_v0  ;;  %605 = vset.pattern.permute.xlu1 %v670_v1  ;;  %v672_v4 = vmov 0   ;;  %v673_v5 = vmov 4   ;;  %v674_v6 = vmov 6   ;;  %v675_v7 = vmov 1   ;;  %v743_v10 = vld [vmem:[%s878_s0] sm:$0xff]  ;;  %s678_s8 = smov 126  }
   0x7   :  { %607 = vset.pattern.permute.xlu2 %v671_v2  ;;  %88 = vperm.xlu0 %604, %v41_v3   ;;  %v676_v8 = vmov 7   ;;  %v677_v9 = vmov 8   ;;  %v750_v13 = vld [vmem:[%s878_s0 + $0x18] sm:$0xff]  ;;  %v755_v14 = vld [vmem:[%s878_s0 + $0x8] sm:$0xff]  ;;  %v760_v15 = vld [vmem:[%s878_s0 + $0x10] sm:$0xff]  ;;  %s679_s0 = smov 110  }
   0x8   :  { %118 = vperm.xlu1 %605, %v41_v3   ;;  %178 = vperm.xlu2 %607, %v41_v3   ;;  %s680_s15 = smov 127   ;;  %s681_s16 = smov 109   ;;  %vm77_vm0 = vcmask 1039360   ;;  %vm107_vm1 = vcmask 1031168   ;;  %vm137_vm2 = vcmask 900096   ;;  %vm167_vm3 = vcmask 891904  }
   0x9   :  { %s682_s17 = smov 108   ;;  %s683_s18 = smov 92   ;;  %vm197_vm4 = vcmask 883712   ;;  %vm227_vm5 = vcmask 752640   ;;  %vm257_vm6 = vcmask 744448   ;;  %vm287_vm7 = vcmask 736256  }
   0xa   :  { %s684_s19 = smov 91   ;;  %s685_s20 = smov 90   ;;  %vm336_vm8 = vcmask 7168   ;;  %vm339_vm9 = vcmask 64512  }
   0xb   :  { %s687_s24 = smov 2   ;;  %s688_s25 = smov 7  }
   0xc   :  { %s689_s30 = smov 8   ;;  %s557_s12 = sshll.u32 %s885_s7, 4  ;;  %s558_s12 = int_to_ptr.hbm [resolvable:$true] %s557_s12 }
   0xd   :  { %s691_s13 = smov 384   ;;  %s692_s14 = smov 24  }
   0xf   :  { %611 = vset.pattern.permute.xlu0 %v672_v4 }
  0x10   :  { %606 = vset.pattern.permute.xlu1 %v673_v5  ;;  %47 = vperm.xlu0 %611, %v41_v3  }
  0x11   :  { %148 = vperm.xlu1 %606, %v41_v3   ;;  %608 = vset.pattern.permute.xlu2 %v674_v6 }
  0x12   :  { %208 = vperm.xlu2 %608, %v41_v3  }
  0x18   :  { %612 = vset.pattern.permute.xlu0 %v675_v7 }
  0x19   :  { %609 = vset.pattern.permute.xlu1 %v676_v8  ;;  %58 = vperm.xlu0 %612, %v41_v3  }
  0x1a   :  { %238 = vperm.xlu1 %609, %v41_v3   ;;  %610 = vset.pattern.permute.xlu2 %v677_v9 }
  0x1b   :  { %268 = vperm.xlu2 %610, %v41_v3  }
  0x62   :  { %v179_v30 = vpop.permute.xlu2 %178 }
  0x63   :  { %v181_v31 = vmul.f32 %v179_v30, %v743_v10  ;;  %v184_v34 = vmul.f32 %v179_v30, %v750_v13  ;;  %v183_v47 = vmul.f32 %v179_v30, %v760_v15  ;;  %v182_v48 = vmul.f32 %v179_v30, %v755_v14 }
  0x6c   :  { %v209_v37 = vpop.permute.xlu2 %208 }
  0x6d   :  { %v213_v38 = vmul.f32 %v209_v37, %v760_v15  ;;  %v212_v50 = vmul.f32 %v209_v37, %v755_v14  ;;  %v211_v51 = vmul.f32 %v209_v37, %v743_v10  ;;  %v214_v53 = vmul.f32 %v209_v37, %v750_v13 }
  0x75   :  { %v269_v45 = vpop.permute.xlu2 %268 }
  0x76   :  { %v271_v46 = vmul.f32 %v269_v45, %v743_v10  ;;  %v274_v49 = vmul.f32 %v269_v45, %v750_v13  ;;  %v273_v56 = vmul.f32 %v269_v45, %v760_v15  ;;  %v272_v57 = vmul.f32 %v269_v45, %v755_v14 }
  0x79   :  { %v89_v11 = vpop.permute.xlu0 %88 }
  0x7a   :  { %v91_v12 = vmul.f32 %v89_v11, %v743_v10  ;;  %v94_v17 = vmul.f32 %v89_v11, %v750_v13  ;;  %v119_v21 = vpop.permute.xlu1 %118  ;;  %v93_v32 = vmul.f32 %v89_v11, %v760_v15  ;;  %v92_v33 = vmul.f32 %v89_v11, %v755_v14 }
  0x7b   :  { %v123_v22 = vmul.f32 %v119_v21, %v760_v15  ;;  %v122_v35 = vmul.f32 %v119_v21, %v755_v14  ;;  %v121_v36 = vmul.f32 %v119_v21, %v743_v10  ;;  %v124_v40 = vmul.f32 %v119_v21, %v750_v13 }
  0x7c   :  { %99 = vrot.lane.b32.xlu0 %v91_v12, %s678_s8 }
  0x82   :  { %v48_v16 = vpop.permute.xlu0 %47 }
  0x83   :  { %v764_v18 = vmul.f32 %v743_v10, %v48_v16  ;;  %v767_v19 = vmul.f32 %v48_v16, %v755_v14  ;;  %v770_v20 = vmul.f32 %v48_v16, %v760_v15  ;;  %v149_v26 = vpop.permute.xlu1 %148 }
  0x84   :  { %105 = vrot.lane.b32.xlu0 %v94_v17, %s678_s8  ;;  %v152_v27 = vmul.f32 %v149_v26, %v755_v14  ;;  %v151_v39 = vmul.f32 %v149_v26, %v743_v10  ;;  %v154_v43 = vmul.f32 %v149_v26, %v750_v13  ;;  %v153_v44 = vmul.f32 %v149_v26, %v760_v15 }
  0x8b   :  { %v59_v23 = vpop.permute.xlu0 %58 }
  0x8c   :  { %133 = vrot.lane.b32.xlu0 %v123_v22, %s679_s0  ;;  %v62_v24 = vmul.f32 %v59_v23, %v755_v14  ;;  %v61_v25 = vmul.f32 %v59_v23, %v743_v10  ;;  %v64_v28 = vmul.f32 %v59_v23, %v750_v13  ;;  %v63_v29 = vmul.f32 %v59_v23, %v760_v15  ;;  %v239_v41 = vpop.permute.xlu1 %238 }
  0x8d   :  { %v242_v42 = vmul.f32 %v239_v41, %v755_v14  ;;  %v241_v52 = vmul.f32 %v239_v41, %v743_v10  ;;  %v244_v54 = vmul.f32 %v239_v41, %v750_v13  ;;  %v243_v55 = vmul.f32 %v239_v41, %v760_v15 }
  0x8e   :  { %71 = vrot.lane.b32.xlu2 %v62_v24, %s680_s15  ;;  %69 = vrot.lane.b32.xlu1 %v61_v25, %s680_s15 }
  0x94   :  { %161 = vrot.lane.b32.xlu0 %v152_v27, %s681_s16 }
  0x96   :  { %75 = vrot.lane.b32.xlu2 %v64_v28, %s680_s15  ;;  %73 = vrot.lane.b32.xlu1 %v63_v29, %s680_s15 }
  0x9c   :  { %189 = vrot.lane.b32.xlu0 %v181_v31, %s682_s17 }
  0x9e   :  { %103 = vrot.lane.b32.xlu2 %v93_v32, %s678_s8  ;;  %101 = vrot.lane.b32.xlu1 %v92_v33, %s678_s8 }
  0xa4   :  { %195 = vrot.lane.b32.xlu0 %v184_v34, %s682_s17 }
  0xa6   :  { %131 = vrot.lane.b32.xlu2 %v122_v35, %s679_s0  ;;  %129 = vrot.lane.b32.xlu1 %v121_v36, %s679_s0 }
  0xac   :  { %223 = vrot.lane.b32.xlu0 %v213_v38, %s683_s18 }
  0xae   :  { %159 = vrot.lane.b32.xlu2 %v151_v39, %s681_s16  ;;  %135 = vrot.lane.b32.xlu1 %v124_v40, %s679_s0 }
  0xb4   :  { %251 = vrot.lane.b32.xlu0 %v242_v42, %s684_s19 }
  0xb6   :  { %165 = vrot.lane.b32.xlu2 %v154_v43, %s681_s16  ;;  %163 = vrot.lane.b32.xlu1 %v153_v44, %s681_s16 }
  0xbc   :  { %279 = vrot.lane.b32.xlu0 %v271_v46, %s685_s20 }
  0xbe   :  { %193 = vrot.lane.b32.xlu2 %v183_v47, %s682_s17  ;;  %191 = vrot.lane.b32.xlu1 %v182_v48, %s682_s17 }
  0xc4   :  { %285 = vrot.lane.b32.xlu0 %v274_v49, %s685_s20 }
  0xc6   :  { %221 = vrot.lane.b32.xlu2 %v212_v50, %s683_s18  ;;  %219 = vrot.lane.b32.xlu1 %v211_v51, %s683_s18 }
  0xce   :  { %249 = vrot.lane.b32.xlu2 %v241_v52, %s684_s19  ;;  %225 = vrot.lane.b32.xlu1 %v214_v53, %s683_s18 }
  0xd6   :  { %255 = vrot.lane.b32.xlu2 %v244_v54, %s684_s19  ;;  %253 = vrot.lane.b32.xlu1 %v243_v55, %s684_s19 }
  0xde   :  { %283 = vrot.lane.b32.xlu2 %v273_v56, %s685_s20  ;;  %281 = vrot.lane.b32.xlu1 %v272_v57, %s685_s20 }
  0xe8   :  { %v72_v58 = vpop.permute.xlu2 %71 }
  0xee   :  { %v100_v60 = vpop.permute.xlu0 %99 }
  0xf0   :  { %v76_v59 = vpop.permute.xlu2 %75 }
  0xf6   :  { %v106_v62 = vpop.permute.xlu0 %105 }
  0xf8   :  { %v104_v61 = vpop.permute.xlu2 %103 }
  0xf9   :  { %v110_v27 = vsel %vm107_vm1, %v104_v61, %v106_v62  ;;  %v297_v62 = vld [vmem:[%s879_s1] sm:$0x7] }
  0xfe   :  { %v134_v2 = vpop.permute.xlu0 %133 }
 0x100   :  { %v70_v63 = vpop.permute.xlu1 %69  ;;  %v132_v3 = vpop.permute.xlu2 %131 }
 0x101   :  { %v78_v0 = vsel %vm77_vm0, %v70_v63, %v72_v58  ;;  %v139_v41 = vsel %vm137_vm2, %v132_v3, %v134_v2 }
 0x102   :  { %v84_v1 = vadd.f32 %v78_v0, %v764_v18 }
 0x106   :  { %v162_v7 = vpop.permute.xlu0 %161 }
 0x108   :  { %v74_v4 = vpop.permute.xlu1 %73  ;;  %v160_v8 = vpop.permute.xlu2 %159 }
 0x109   :  { %v79_v5 = vsel %vm77_vm0, %v72_v58, %v74_v4  ;;  %v80_v26 = vsel %vm77_vm0, %v74_v4, %v76_v59  ;;  %v168_v43 = vsel %vm167_vm3, %v160_v8, %v162_v7  ;;  %v299_v4 = vperm.slane %v297_v62, 0 }
 0x10a   :  { %v85_v6 = vadd.f32 %v79_v5, %v767_v19  ;;  %v86_v19 = vadd.f32 %v80_v26, %v770_v20  ;;  %v301_v5 = vperm.slane %v297_v62, 2 }
 0x10c   :  { %v116_v31 = vadd.f32 %v110_v27, %v86_v19  ;;  %v319_v27 = vld [vmem:[%s881_s3] sm:$0xff]  ;;  %s686_s3 = smov 1  }
 0x10e   :  { %v190_v12 = vpop.permute.xlu0 %189 }
 0x110   :  { %v102_v10 = vpop.permute.xlu1 %101  ;;  %v166_v13 = vpop.permute.xlu2 %165 }
 0x111   :  { %v108_v28 = vsel %vm107_vm1, %v100_v60, %v102_v10  ;;  %v109_v29 = vsel %vm107_vm1, %v102_v10, %v104_v61 }
 0x112   :  { %v114_v35 = vadd.f32 %v108_v28, %v84_v1  ;;  %v115_v36 = vadd.f32 %v109_v29, %v85_v6  ;;  %v320_v28 = vmul.f32 256.0, %v319_v27  ;;  %v322_v29 = vmul.f32 2.0, %v319_v27 }
 0x114   :  { %v145_v44 = vadd.f32 %v139_v41, %v115_v36 }
 0x116   :  { %v196_v15 = vpop.permute.xlu0 %195 }
 0x118   :  { %v130_v11 = vpop.permute.xlu1 %129  ;;  %v194_v16 = vpop.permute.xlu2 %193 }
 0x119   :  { %v138_v33 = vsel %vm137_vm2, %v130_v11, %v132_v3  ;;  %v200_v45 = vsel %vm197_vm4, %v194_v16, %v196_v15  ;;  %v300_v11 = vperm.slane %v297_v62, 1 }
 0x11a   :  { %v144_v40 = vadd.f32 %v138_v33, %v114_v35  ;;  %v325_v33 = vmul.f32 %v319_v27, %v319_v27 }
 0x11c   :  { %v174_v50 = vadd.f32 %v168_v43, %v144_v40  ;;  %v326_v35 = vmul.f32 256.0, %v325_v33  ;;  %v338_v40 = vld [vmem:[#allocation2] sm:$0xff] }
 0x11e   :  { %v224_v21 = vpop.permute.xlu0 %223 }
 0x120   :  { %v136_v14 = vpop.permute.xlu1 %135  ;;  %v222_v22 = vpop.permute.xlu2 %221 }
 0x121   :  { %v140_v30 = vsel %vm137_vm2, %v134_v2, %v136_v14  ;;  %v229_v63 = vsel %vm227_vm5, %v222_v22, %v224_v21 }
 0x122   :  { %v146_v37 = vadd.f32 %v140_v30, %v116_v31 }
 0x126   :  { %v252_v23 = vpop.permute.xlu0 %251 }
 0x128   :  { %v164_v17 = vpop.permute.xlu1 %163  ;;  %v250_v24 = vpop.permute.xlu2 %249 }
 0x129   :  { %v170_v34 = vsel %vm167_vm3, %v164_v17, %v166_v13  ;;  %v169_v42 = vsel %vm167_vm3, %v162_v7, %v164_v17  ;;  %v258_v2 = vsel %vm257_vm6, %v250_v24, %v252_v23 }
 0x12a   :  { %v176_v20 = vadd.f32 %v170_v34, %v146_v37  ;;  %v175_v49 = vadd.f32 %v169_v42, %v145_v44 }
 0x12c   :  { %v206_v51 = vadd.f32 %v200_v45, %v176_v20 }
 0x12e   :  { %v280_v39 = vpop.permute.xlu0 %279 }
 0x130   :  { %v192_v18 = vpop.permute.xlu1 %191  ;;  %v256_v38 = vpop.permute.xlu2 %255 }
 0x131   :  { %v198_v46 = vsel %vm197_vm4, %v190_v12, %v192_v18  ;;  %v199_v47 = vsel %vm197_vm4, %v192_v18, %v194_v16 }
 0x132   :  { %v204_v55 = vadd.f32 %v198_v46, %v174_v50  ;;  %v205_v56 = vadd.f32 %v199_v47, %v175_v49 }
 0x134   :  { %v235_v1 = vadd.f32 %v229_v63, %v205_v56  ;;  %v449_v63 = vld [vmem:[%s884_s6 + $0x8] sm:$0xff] }
 0x136   :  { %v286_v60 = vpop.permute.xlu0 %285 }
 0x138   :  { %v220_v25 = vpop.permute.xlu1 %219  ;;  %v284_v58 = vpop.permute.xlu2 %283 }
 0x139   :  { %v228_v53 = vsel %vm227_vm5, %v220_v25, %v222_v22  ;;  %v290_v3 = vsel %vm287_vm7, %v284_v58, %v286_v60 }
 0x13a   :  { %v234_v59 = vadd.f32 %v228_v53, %v204_v55 }
 0x13c   :  { %v264_v10 = vadd.f32 %v258_v2, %v234_v59 }
 0x140   :  { %v226_v32 = vpop.permute.xlu1 %225 }
 0x141   :  { %v230_v48 = vsel %vm227_vm5, %v224_v21, %v226_v32 }
 0x142   :  { %v236_v57 = vadd.f32 %v230_v48, %v206_v51 }
 0x148   :  { %v254_v52 = vpop.permute.xlu1 %253 }
 0x149   :  { %v260_v54 = vsel %vm257_vm6, %v254_v52, %v256_v38  ;;  %v259_v0 = vsel %vm257_vm6, %v252_v23, %v254_v52 }
 0x14a   :  { %v266_v61 = vadd.f32 %v260_v54, %v236_v57  ;;  %v265_v6 = vadd.f32 %v259_v0, %v235_v1  ;;  %v448_v0 = vld [vmem:[%s884_s6] sm:$0xff] }
 0x14c   :  { %v296_v7 = vadd.f32 %v290_v3, %v266_v61 }
 0x14e   :  { %v307_v21 = vmul.f32 %v301_v5, %v296_v7 }
 0x150   :  { %v282_v8 = vpop.permute.xlu1 %281  ;;  %v314_v25 = vmul.f32 %v307_v21, %v296_v7 }
 0x151   :  { %v288_v12 = vsel %vm287_vm7, %v280_v39, %v282_v8  ;;  %v289_v13 = vsel %vm287_vm7, %v282_v8, %v284_v58  ;;  %v403_v8 = vld [vmem:[%s883_s5 + $0x8] sm:$0xff] }
 0x152   :  { %v294_v14 = vadd.f32 %v288_v12, %v264_v10  ;;  %v295_v15 = vadd.f32 %v289_v13, %v265_v6  ;;  %v402_v6 = vld [vmem:[%s883_s5] sm:$0xff]  ;;  %s690_s5 = smov [#allocation5]  }
 0x153   :  { %s555_s9 = sshll.u32 %s690_s5, 4  ;;  %s556_s9 = int_to_ptr.vmem [resolvable:$true] %s555_s9 }
 0x154   :  { %491 = vmatpush.msra.mxu2 %v294_v14  ;;  %514 = vmatpush.msra.mxu3 %v295_v15  ;;  %v305_v16 = vmul.f32 %v299_v4, %v294_v14  ;;  %v306_v17 = vmul.f32 %v300_v11, %v295_v15 }
 0x156   :  { %v308_v22 = vadd.f32 %v306_v17, %v305_v16  ;;  %v312_v18 = vmul.f32 %v305_v16, %v294_v14  ;;  %v313_v23 = vmul.f32 %v306_v17, %v295_v15 }
 0x158   :  { %v309_v24 = vadd.f32 %v308_v22, %v307_v21  ;;  %v315_v26 = vadd.f32 %v313_v23, %v312_v18 }
 0x15a   :  { %310 = vadd.xlane.f32.xlu1 %v309_v24  ;;  %v316_v19 = vadd.f32 %v315_v26, %v314_v25 }
 0x15c   :  { %317 = vadd.xlane.f32.xlu2 %v316_v19 }
 0x1cd   :  { %v311_v30 = vpop.xlane.xlu1 %310 }
 0x1ce   :  { %v321_v31 = vadd.f32 %v320_v28, %v311_v30  ;;  %v323_v32 = vmul.f32 %v322_v29, %v311_v30 }
 0x1cf   :  { %v318_v34 = vpop.xlane.xlu2 %317 }
 0x1d0   :  { %329 = vrot.lane.b32.xlu0 %v321_v31, %s678_s8  ;;  %v324_v36 = vadd.f32 %v323_v32, %v318_v34 }
 0x1d2   :  { %v327_v37 = vadd.f32 %v326_v35, %v324_v36 }
 0x1d8   :  { %333 = vrot.lane.b32.xlu0 %v327_v37, %s680_s15 }
 0x242   :  { %v330_v38 = vpop.permute.xlu0 %329 }
 0x24a   :  { %v334_v39 = vpop.permute.xlu0 %333 }
 0x24b   :  { %v337_v20 = vsel %vm336_vm8, %v330_v38, %v334_v39 }
 0x24c   :  { %358 = vmatpush.msra.mxu0 %v337_v20 }
 0x24d   :  { %570 = vmatmul.msk.f32.vlgmr.msra.gmra.mxu0 %vm339_vm9, %v338_v40 }
 0x24e   :  { %537 = vmatpush.msrb.mxu0 %v296_v7 }
 0x2ca   :  { %v360_v41 = vpop.f32.mrf.mxu0 }
 0x2cb   :  { %v363_v42 = vmul.f32 0.00390625, %v360_v41 }
 0x2cd   :  { %v364_v43 = vmul.f32 %v363_v42, %v363_v42 }
 0x2cf   :  { %366 = vrot.lane.b32.xlu0 %v364_v43, %s686_s3 }
 0x2d7   :  { %383 = vrot.lane.b32.xlu0 %v319_v27, %s686_s3 }
 0x2df   :  { %388 = vrot.lane.b32.xlu0 %v363_v42, %s687_s24 }
 0x341   :  { %v367_v44 = vpop.permute.xlu0 %366 }
 0x342   :  { %v369_v45 = vsub.f32 %v363_v42, %v367_v44 }
 0x344   :  { %v370_v46 = vmax.f32 %v369_v45, 0.0 }
 0x346   :  { %v371_v47 = vadd.f32 1e-05, %v370_v46 }
 0x348   :  { %614 = vrsqrt.f32 %v371_v47  ;;  %vm378_vm11 = vweird.f32 %v371_v47 }
 0x349   :  { %v384_v55 = vpop.permute.xlu0 %383 }
 0x34e   :  { %v615_v48 = vpop.eup %614 }
 0x34f   :  { %v373_v49 = vmul.f32 %v615_v48, %v371_v47  ;;  %vm379_vm10 = vweird.f32 %v615_v48 }
 0x350   :  { %vm380_vm12 = vmor %vm378_vm11, %vm379_vm10 }
 0x351   :  { %v374_v50 = vmul.f32 %v615_v48, %v373_v49  ;;  %v389_v57 = vpop.permute.xlu0 %388 }
 0x352   :  { %v391_v58 = vsub.f32 %v319_v27, %v389_v57 }
 0x353   :  { %v375_v51 = vmul.f32 0.5, %v374_v50 }
 0x355   :  { %v376_v52 = vsub.f32 1.5, %v375_v51 }
 0x357   :  { %v377_v53 = vmul.f32 %v615_v48, %v376_v52 }
 0x359   :  { %v381_v54 = vsel %vm380_vm12, %v615_v48, %v377_v53 }
 0x35a   :  { %v386_v56 = vmul.f32 %v384_v55, %v381_v54 }
 0x35c   :  { %410 = vperm.xlu0 %612, %v386_v56   ;;  %393 = vrot.lane.b32.xlu2 %v386_v56, %s686_s3 }
 0x364   :  { %613 = vset.pattern.permute.xlu0 %v677_v9  ;;  %452 = vrot.lane.b32.xlu2 %v448_v0, %s689_s30  ;;  %v404_v9 = vlaneseq }
 0x366   :  { %v405_v2 = vshrl.u32 %v404_v9, 7  ;;  %v407_v3 = vand.u32 127, %v404_v9 }
 0x368   :  { %vm408_vm13 = vcmp.eq.s32.totalorder %v405_v2, %v407_v3 }
 0x3b6   :  { %v394_v59 = vpop.permute.xlu2 %393 }
 0x3b7   :  { %v396_v60 = vmul.f32 %v394_v59, %v391_v58 }
 0x3b9   :  { %398 = vrot.lane.b32.xlu1 %v396_v60, %s680_s15 }
 0x3be   :  { %v453_v10 = vpop.permute.xlu2 %452 }
 0x3c1   :  { %454 = vrot.lane.b32.xlu1 %v449_v63, %s689_s30 }
 0x3ce   :  { %v411_v1 = vpop.permute.xlu0 %410 }
 0x3cf   :  { %v413_v4 = vsel %vm408_vm13, %v411_v1, 0.0 }
 0x42b   :  { %v399_v61 = vpop.permute.xlu1 %398 }
 0x42c   :  { %v401_v62 = vadd.f32 %v399_v61, %v319_v27 }
 0x42e   :  { %415 = vrot.lane.b32.xlu0 %v401_v62, %s688_s25 }
 0x433   :  { %v455_v13 = vpop.permute.xlu1 %454 }
 0x4a0   :  { %v416_v5 = vpop.permute.xlu0 %415 }
 0x4a1   :  { %v418_v7 = vsel %vm339_vm9, %v413_v4, %v416_v5 }
 0x4a2   :  { %440 = vmatpush.msra.mxu1 %v418_v7 }
 0x4a3   :  { %571 = vmatmul.msk.f32.vlgmr.msra.gmra.mxu1 %vm339_vm9, %v402_v6 }
 0x4ab   :  { %572 = vmatmul.msk.f32.gmra.mxu1 %vm339_vm9, %v403_v8 }
 0x520   :  { %v442_v11 = vpop.f32.mrf.mxu1 }
 0x521   :  { %573 = vmatmul.msk.f32.vlgmr.msra.gmra.mxu2 %vm339_vm9, %v442_v11  ;;  %575 = vmatmul.msk.f32.vlgmr.msra.gmra.mxu3 %vm339_vm9, %v442_v11  ;;  %v458_v12 = vadd.f32 %v453_v10, %v442_v11 }
 0x522   :  { %577 = vmatmul.msk.f32.vlgmr.msrb.gmra.mxu0 %vm339_vm9, %v442_v11 }
 0x523   :  { %462 = vperm.xlu0 %613, %v458_v12  }
 0x528   :  { %v445_v14 = vpop.f32.mrf.mxu1 }
 0x529   :  { %v459_v15 = vadd.f32 %v455_v13, %v445_v14  ;;  %574 = vmatmul.msk.f32.gmra.mxu2 %vm339_vm9, %v445_v14  ;;  %576 = vmatmul.msk.f32.gmra.mxu3 %vm339_vm9, %v445_v14 }
 0x52a   :  { %578 = vmatmul.msk.f32.gmra.mxu0 %vm339_vm9, %v445_v14 }
 0x52b   :  { %467 = vperm.xlu2 %610, %v459_v15  }
 0x585   :  { %v468_v25 = vpop.permute.xlu2 %467 }
 0x595   :  { %v463_v16 = vpop.permute.xlu0 %462 }
 0x59f   :  { %v539_v17 = vpop.f32.mrf.mxu0 }
 0x5a0   :  { %v540_v21 = vadd.f32 %v539_v17, %v463_v16 }
 0x5a2   :  { %547 = vst [vmem:[#allocation5 + $0x10] sm:$0xff] %v540_v21 }
 0x5a4   :  { %v493_v22 = vpop.f32.mrf.mxu2  ;;  %v516_v18 = vpop.f32.mrf.mxu3 }
 0x5a5   :  { %v494_v23 = vadd.f32 %v493_v22, %v463_v16  ;;  %v517_v24 = vadd.f32 %v516_v18, %v463_v16 }
 0x5a7   :  { %545 = vst [vmem:[#allocation5] sm:$0xff] %v494_v23  ;;  %v542_v26 = vpop.f32.mrf.mxu0 }
 0x5a8   :  { %546 = vst [vmem:[#allocation5 + $0x8] sm:$0xff] %v517_v24  ;;  %v543_v19 = vadd.f32 %v542_v26, %v468_v25 }
 0x5aa   :  { %550 = vst [vmem:[#allocation5 + $0x28] sm:$0xff] %v543_v19 }
 0x5ac   :  { %v496_v27 = vpop.f32.mrf.mxu2  ;;  %v519_v28 = vpop.f32.mrf.mxu3 }
 0x5ad   :  { %v497_v29 = vadd.f32 %v496_v27, %v468_v25  ;;  %v520_v30 = vadd.f32 %v519_v28, %v468_v25 }
 0x5af   :  { %548 = vst [vmem:[#allocation5 + $0x18] sm:$0xff] %v497_v29 }
 0x5b0   :  { %549 = vst [vmem:[#allocation5 + $0x20] sm:$0xff] %v520_v30 }
 0x5b1   :  { %563 = dma.vmem_to_hbm [thread:$0]  %s556_s9, 768, %s558_s12, [#allocation4], %s691_s13, %s691_s13, %s692_s14  }
 0x5b2   :  { %666 = dma.done.wait [#allocation4], 768  }
 0x5b3   :  { %667 = vsyncadd [#allocation4], 4294966528 }
 0x5b4   :  { %568 = vsyncpa [#allocation3], 1 }
 0x5b5   :  { %569 = vsyncpa [#allocation4], 1 }

</bundles_post_ra>
